<compile_context>
chip_gen: v7x
topology: tpu7x:2x2x1
jax: 0.10.0
libtpu: 0.0.40
codegen_flags: <defaults>
</compile_context>

<pallas_src>
import math

import jax
import jax.numpy as jnp
from jax.experimental import pallas as pl
from jax.experimental.pallas import tpu as pltpu

LN_EPS = 1e-5
LANE = 128


def _round_up(n, m):
    return ((n + m - 1) // m) * m


def _layernorm(x, gamma, beta):
    mu = jnp.mean(x, axis=-1, keepdims=True)
    var = jnp.mean((x - mu) ** 2, axis=-1, keepdims=True)
    return (x - mu) * jax.lax.rsqrt(var + LN_EPS) * gamma + beta


def _make_kernel(tile_b, seq_len, dim, dim_p):
    bf16 = jnp.bfloat16

    def kernel(x_ref, p6_ref, wqkv_ref, bqkv_ref, wo_ref,
               w1_ref, bm1_ref, w2_ref, o_ref):
        # x_ref: (tile_b * seq_len, dim)
        x = x_ref[...].astype(jnp.float32)

        p6 = p6_ref[...]                      # (6, dim) f32
        g1, b1 = p6[0:1], p6[1:2]
        g2, b2 = p6[2:3], p6[3:4]
        bo, bm2 = p6[4:5], p6[5:6]

        # ---- attention branch ------------------------------------------------
        n1 = _layernorm(x, g1, b1)            # (rows, D) f32

        # Fused QKV projection: one MXU pass, f32 accumulate.  Each
        # projection's column group is zero-padded to dim_p (multiple of 128
        # lanes) so the slices below start on lane-tile boundaries, and the
        # 1/sqrt(D) scale is already folded into the Q columns / bias.
        qkv = jnp.dot(n1.astype(bf16), wqkv_ref[...],
                      preferred_element_type=jnp.float32) + bqkv_ref[...]
        q = qkv[:, 0 * dim_p:1 * dim_p].reshape(tile_b, seq_len, dim_p)
        k = qkv[:, 1 * dim_p:2 * dim_p].reshape(tile_b, seq_len, dim_p)
        v = qkv[:, 2 * dim_p:3 * dim_p].reshape(tile_b, seq_len, dim_p)

        # Batched scores without an explicit K transpose; padded lanes of q/k
        # are exactly zero so contracting over dim_p is exact.
        s = jnp.einsum("bqd,bkd->bqk", q.astype(bf16), k.astype(bf16),
                       preferred_element_type=jnp.float32)
        # TODO(synk): at real MobileViT L, block over K/V (flash-style running
        # max / denominator) so the f32 (TB, L, L) tensor never materializes —
        # hard requirement under v7x's 64 MiB VMEM.
        m = jnp.max(s, axis=-1, keepdims=True)
        p = jnp.exp(s - m)
        p = p * pl.reciprocal(jnp.sum(p, axis=-1, keepdims=True), approx=True)

        ctx = jnp.einsum("bqk,bkd->bqd", p.astype(bf16), v.astype(bf16),
                         preferred_element_type=jnp.float32)
        ctx = ctx.reshape(tile_b * seq_len, dim_p)

        # Out-projection: padded rows of Wo are zero -> exact.
        attn_out = jnp.dot(ctx.astype(bf16), wo_ref[...],
                           preferred_element_type=jnp.float32) + bo
        x1 = x + attn_out                     # residual 1 (f32)

        # ---- MLP branch ------------------------------------------------------
        n2 = _layernorm(x1, g2, b2)
        h = jnp.dot(n2.astype(bf16), w1_ref[...],
                    preferred_element_type=jnp.float32) + bm1_ref[...]
        h = h * jax.nn.sigmoid(h)             # SiLU in f32 (v5e: no bf16 EUP)
        y = jnp.dot(h.astype(bf16), w2_ref[...],
                    preferred_element_type=jnp.float32) + bm2

        # TODO(synk): D < 128 lowers this to masked vst.msk partial stores; at
        # real MobileViT dims present a lane-dense (>=128-wide) output slab.
        o_ref[...] = (x1 + y).astype(o_ref.dtype)

    return kernel


# ---------------------------------------------------------------------------
# VMEM sizing / tiling helpers
# ---------------------------------------------------------------------------
def _vmem_limit_bytes():
    """Explicit scoped-VMEM request; defaults are only 16 MiB (v5e) / 32 MiB."""
    try:
        cap = pltpu.get_tpu_info().vmem_capacity_bytes   # 128 MiB v5e/v6e, 64 MiB v7x
    except Exception:
        cap = 64 << 20                                   # conservative (v7x physical)
    return min((cap * 3) // 4, 100 << 20)


def _step_vmem_bytes(tile_b, seq, dim, dim_p, mlp_dim):
    """Rough per-grid-step working set: f32 activations + f32 scores/probs +
    double-buffered x/out + (currently double-buffered) bf16/f32 weights."""
    rows = tile_b * seq
    acts = rows * (4 * dim + 4 * dim_p + 2 * mlp_dim) * 4
    scores = 2 * tile_b * seq * seq * 4          # scores + probs, f32
    xio = 2 * 2 * rows * dim * 4                 # x in + out, double-buffered
    # TODO(synk): single-buffer the grid-invariant weights to reclaim half of
    # this for a bigger tile_b (most valuable on v7x's 64 MiB VMEM).
    weights = 2 * (2 * (dim * 3 * dim_p + dim_p * dim + 2 * dim * mlp_dim)
                   + 4 * (6 * dim + 3 * dim_p + mlp_dim + dim))
    return acts + scores + xio + weights


def _pick_tile_b(batch, seq, dim, dim_p, mlp_dim, vmem_budget_bytes):
    """Pick the batch tile such that:
      * tile_b divides batch,
      * rows = tile_b*seq is a multiple of 8 (f32 sublane tile) unless the
        tile is the whole slab,
      * the per-step working set fits the VMEM budget,
      * grid length stays >= 2 when batch > 1 (shards across v7x's 2 TCs;
        harmless on v5e/v6e which have 1 TC),
      * rows targets ~256 to keep the 256-wide v6e/v7x MXU fed when possible.
    """
    target_rows = 256
    divisors = [t for t in range(1, batch + 1) if batch % t == 0]
    ok = [t for t in divisors
          if ((t * seq) % 8 == 0 or t == batch)
          and _step_vmem_bytes(t, seq, dim, dim_p, mlp_dim) <= vmem_budget_bytes]
    if not ok:
        ok = [batch]          # full-slab block is always a legal BlockSpec
    if batch > 1:
        two_core = [t for t in ok if batch // t >= 2]
        if two_core:
            ok = two_core
    for t in sorted(ok):
        if t * seq >= target_rows:
            return t
    return max(ok)


# ---------------------------------------------------------------------------
# One-time parameter packing (hoisted out of the per-call path)
# ---------------------------------------------------------------------------
def pack_params(params):
    """Pack/pad/cast weights into kernel-ready device arrays ONCE.

    Running these concatenates / pads / bf16 casts on every call would be
    un-hidden XLA ops whose HBM traffic rivals the kernel at small dims.
    """
    dim = params["wq_t"].shape[0]
    dim_p = _round_up(dim, LANE)
    inv_sqrt_d = 1.0 / math.sqrt(dim)

    def pad_cols(w):
        return jnp.pad(w, ((0, 0), (0, dim_p - w.shape[1])))

    # Fold 1/sqrt(D) into the Q projection (weight AND bias).
    wq = params["wq_t"] * inv_sqrt_d
    bq = params["bq"] * inv_sqrt_d

    wqkv = jnp.concatenate(
        [pad_cols(wq), pad_cols(params["wk_t"]), pad_cols(params["wv_t"])],
        axis=1).astype(jnp.bfloat16)                                   # (D, 3*Dp)
    bqkv = jnp.concatenate(
        [pad_cols(bq), pad_cols(params["bk"]), pad_cols(params["bv"])],
        axis=1)                                                        # (1, 3*Dp) f32
    # Out-projection consumes the Dp-wide (zero-padded) attention context.
    wo = jnp.pad(params["wo_t"],
                 ((0, dim_p - dim), (0, 0))).astype(jnp.bfloat16)      # (Dp, D)

    p6 = jnp.concatenate([params["g1"], params["b1"],
                          params["g2"], params["b2"],
                          params["bo"], params["bm2"]], axis=0)        # (6, D) f32

    return dict(
        p6=p6, wqkv=wqkv, bqkv=bqkv, wo=wo,
        w1=params["w1_t"].astype(jnp.bfloat16),                        # (D, mlp)
        bm1=params["bm1"],                                             # (1, mlp) f32
        w2=params["w2_t"].astype(jnp.bfloat16),                        # (mlp, D)
    )


# ---------------------------------------------------------------------------
# Wrapper
# ---------------------------------------------------------------------------
def transformer_block(x, packed):
    """x: (B, L, D) float32.  packed: result of pack_params() (reused)."""
    B, L, D = x.shape
    Dp = packed["wo"].shape[0]
    mlp_dim = packed["w1"].shape[1]

    vmem_limit = _vmem_limit_bytes()
    tile_b = _pick_tile_b(B, L, D, Dp, mlp_dim,
                          vmem_budget_bytes=(vmem_limit * 4) // 5)
    grid = (B // tile_b,)
    rows = tile_b * L

    xf = x.reshape(B * L, D)                 # free HBM reshape

    def const_spec(shape):
        return pl.BlockSpec(shape, lambda b: tuple(0 for _ in shape))

    in_specs = [
        pl.BlockSpec((rows, D), lambda b: (b, 0)),   # x slab
        const_spec((6, D)),                          # packed ln/bias vectors
        const_spec((D, 3 * Dp)),                     # fused, lane-padded Wqkv^T (bf16)
        const_spec((1, 3 * Dp)),                     # fused, lane-padded qkv bias (f32)
        const_spec((Dp, D)),                         # Wo^T, rows zero-padded (bf16)
        const_spec((D, mlp_dim)),                    # W1^T (bf16)
        const_spec((1, mlp_dim)),                    # b1 (f32)
        const_spec((mlp_dim, D)),                    # W2^T (bf16)
    ]

    out = pl.pallas_call(
        _make_kernel(tile_b, L, D, Dp),
        out_shape=jax.ShapeDtypeStruct((B * L, D), x.dtype),
        grid_spec=pltpu.PrefetchScalarGridSpec(
            num_scalar_prefetch=0,
            grid=grid,
            in_specs=in_specs,
            out_specs=pl.BlockSpec((rows, D), lambda b: (b, 0)),
        ),
        compiler_params=pltpu.CompilerParams(
            dimension_semantics=("parallel",),
            vmem_limit_bytes=int(vmem_limit),
        ),
    )(xf, packed["p6"], packed["wqkv"], packed["bqkv"], packed["wo"],
      packed["w1"], packed["bm1"], packed["w2"])

    return out.reshape(B, L, D)


# ---------------------------------------------------------------------------
# Synthetic params + pure-JAX reference
# ---------------------------------------------------------------------------
def init_params(key, dim, mlp_dim):
    """Deterministic synthetic parameters matching the PyTorch module shapes."""
    ks = jax.random.split(key, 10)
    s = 0.1
    # nn.MultiheadAttention: in_proj_weight (3*dim, dim) split into q/k/v,
    # out_proj.weight (dim, dim).  nn.Linear applies x @ W.T, so we store W.T.
    wq = jax.random.normal(ks[0], (dim, dim), jnp.float32) * s
    wk = jax.random.normal(ks[1], (dim, dim), jnp.float32) * s
    wv = jax.random.normal(ks[2], (dim, dim), jnp.float32) * s
    wo = jax.random.normal(ks[3], (dim, dim), jnp.float32) * s
    w1 = jax.random.normal(ks[4], (mlp_dim, dim), jnp.float32) * s
    w2 = jax.random.normal(ks[5], (dim, mlp_dim), jnp.float32) * s
    return dict(
        g1=jnp.ones((1, dim), jnp.float32),
        b1=jnp.zeros((1, dim), jnp.float32),
        wq_t=wq.T, wk_t=wk.T, wv_t=wv.T,
        bq=jax.random.normal(ks[6], (1, dim), jnp.float32) * s,
        bk=jax.random.normal(ks[7], (1, dim), jnp.float32) * s,
        bv=jax.random.normal(ks[8], (1, dim), jnp.float32) * s,
        wo_t=wo.T,
        bo=jnp.zeros((1, dim), jnp.float32),
        g2=jnp.ones((1, dim), jnp.float32),
        b2=jnp.zeros((1, dim), jnp.float32),
        w1_t=w1.T,
        bm1=jax.random.normal(ks[9], (1, mlp_dim), jnp.float32) * s,
        w2_t=w2.T,
        bm2=jnp.zeros((1, dim), jnp.float32),
    )


def transformer_block_ref(x, p):
    """Pure-JAX f32 reference mirroring the PyTorch forward (dropout=0)."""
    def ln(z, g, b):
        mu = jnp.mean(z, -1, keepdims=True)
        var = jnp.mean((z - mu) ** 2, -1, keepdims=True)
        return (z - mu) / jnp.sqrt(var + LN_EPS) * g + b

    n1 = ln(x, p["g1"], p["b1"])
    q = n1 @ p["wq_t"] + p["bq"]
    k = n1 @ p["wk_t"] + p["bk"]
    v = n1 @ p["wv_t"] + p["bv"]
    scores = jnp.einsum("bld,bmd->blm", q, k) / math.sqrt(x.shape[-1])
    attn = jax.nn.softmax(scores, axis=-1)
    o = jnp.einsum("blm,bmd->bld", attn, v) @ p["wo_t"] + p["bo"]
    x1 = x + o
    n2 = ln(x1, p["g2"], p["b2"])
    h = n2 @ p["w1_t"] + p["bm1"]
    h = h * jax.nn.sigmoid(h)
    y = h @ p["w2_t"] + p["bm2"]
    return x1 + y


if __name__ == "__main__":
    B, L, D, MLP = 2, 8, 32, 64          # batch, seq, dim, mlp_dim
    key = jax.random.PRNGKey(0)
    kx, kp = jax.random.split(key)
    x = jax.random.normal(kx, (B, L, D), jnp.float32)
    params = init_params(kp, D, MLP)

    # One-time packing; reused across every forward call.
    packed = jax.block_until_ready(pack_params(params))

    out = jax.block_until_ready(transformer_block(x, packed))
    ref = transformer_block_ref(x, params)

    assert out.shape == (B, L, D)
    # Tolerance reflects bf16 MXU inputs (f32 accumulation) + approx reciprocal.
    max_err = float(jnp.max(jnp.abs(out - ref)))
    assert jnp.allclose(out, ref, atol=3e-2, rtol=3e-2), max_err
    print("KERNEL_OK")
</pallas_src>

<mosaic_0001>
module attributes {stable_mosaic.version = 11 : i64} {
  func.func @kernel(%arg0: i32, %arg1: memref<8x32xf32, #tpu.memory_space<vmem>>, %arg2: memref<6x32xf32, #tpu.memory_space<vmem>>, %arg3: memref<32x384xbf16, #tpu.memory_space<vmem>>, %arg4: memref<1x384xf32, #tpu.memory_space<vmem>>, %arg5: memref<128x32xbf16, #tpu.memory_space<vmem>>, %arg6: memref<32x64xbf16, #tpu.memory_space<vmem>>, %arg7: memref<1x64xf32, #tpu.memory_space<vmem>>, %arg8: memref<64x32xbf16, #tpu.memory_space<vmem>>, %arg9: memref<8x32xf32, #tpu.memory_space<vmem>>) attributes {dimension_semantics = [#tpu.dimension_semantics<parallel>], iteration_bounds = array<i64: 2>, scalar_prefetch = 0 : i64, scratch_operands = 0 : i64, tpu.core_type = #tpu.core_type<tc>, window_params = [{transform_indices = @transform_0, window_bounds = array<i64: 8, 32>}, {pipeline_mode = #tpu.pipeline_mode<synchronous>, transform_indices = @transform_1, window_bounds = array<i64: 6, 32>}, {pipeline_mode = #tpu.pipeline_mode<synchronous>, transform_indices = @transform_2, window_bounds = array<i64: 32, 384>}, {pipeline_mode = #tpu.pipeline_mode<synchronous>, transform_indices = @transform_3, window_bounds = array<i64: 1, 384>}, {pipeline_mode = #tpu.pipeline_mode<synchronous>, transform_indices = @transform_4, window_bounds = array<i64: 128, 32>}, {pipeline_mode = #tpu.pipeline_mode<synchronous>, transform_indices = @transform_5, window_bounds = array<i64: 32, 64>}, {pipeline_mode = #tpu.pipeline_mode<synchronous>, transform_indices = @transform_6, window_bounds = array<i64: 1, 64>}, {pipeline_mode = #tpu.pipeline_mode<synchronous>, transform_indices = @transform_7, window_bounds = array<i64: 64, 32>}, {transform_indices = @transform_8, window_bounds = array<i64: 8, 32>}]} {
    %c0 = arith.constant 0 : index
    %c0_0 = arith.constant 0 : index
    %0 = vector.load %arg1[%c0, %c0_0] : memref<8x32xf32, #tpu.memory_space<vmem>>, vector<8x32xf32>
    %c0_1 = arith.constant 0 : index
    %c0_2 = arith.constant 0 : index
    %1 = vector.load %arg2[%c0_1, %c0_2] : memref<6x32xf32, #tpu.memory_space<vmem>>, vector<6x32xf32>
    %2 = vector.extract_strided_slice %1 {offsets = [0, 0], sizes = [1, 32], strides = [1, 1]} : vector<6x32xf32> to vector<1x32xf32>
    %3 = vector.extract_strided_slice %1 {offsets = [1, 0], sizes = [1, 32], strides = [1, 1]} : vector<6x32xf32> to vector<1x32xf32>
    %4 = vector.extract_strided_slice %1 {offsets = [2, 0], sizes = [1, 32], strides = [1, 1]} : vector<6x32xf32> to vector<1x32xf32>
    %5 = vector.extract_strided_slice %1 {offsets = [3, 0], sizes = [1, 32], strides = [1, 1]} : vector<6x32xf32> to vector<1x32xf32>
    %6 = vector.extract_strided_slice %1 {offsets = [4, 0], sizes = [1, 32], strides = [1, 1]} : vector<6x32xf32> to vector<1x32xf32>
    %7 = vector.extract_strided_slice %1 {offsets = [5, 0], sizes = [1, 32], strides = [1, 1]} : vector<6x32xf32> to vector<1x32xf32>
    %cst = arith.constant dense<0.000000e+00> : vector<8xf32>
    %8 = vector.multi_reduction <add>, %0, %cst [1] : vector<8x32xf32> to vector<8xf32>
    %9 = vector.shape_cast %8 : vector<8xf32> to vector<8x1xf32>
    %cst_3 = arith.constant 3.200000e+01 : f32
    %10 = vector.broadcast %cst_3 : f32 to vector<8x1xf32>
    %11 = arith.divf %9, %10 : vector<8x1xf32>
    %12 = vector.broadcast %11 : vector<8x1xf32> to vector<8x32xf32>
    %13 = arith.subf %0, %12 : vector<8x32xf32>
    %14 = arith.mulf %13, %13 : vector<8x32xf32>
    %cst_4 = arith.constant dense<0.000000e+00> : vector<8xf32>
    %15 = vector.multi_reduction <add>, %14, %cst_4 [1] : vector<8x32xf32> to vector<8xf32>
    %16 = vector.shape_cast %15 : vector<8xf32> to vector<8x1xf32>
    %cst_5 = arith.constant 3.200000e+01 : f32
    %17 = vector.broadcast %cst_5 : f32 to vector<8x1xf32>
    %18 = arith.divf %16, %17 : vector<8x1xf32>
    %19 = vector.broadcast %11 : vector<8x1xf32> to vector<8x32xf32>
    %20 = arith.subf %0, %19 : vector<8x32xf32>
    %cst_6 = arith.constant 9.99999974E-6 : f32
    %21 = vector.broadcast %cst_6 : f32 to vector<8x1xf32>
    %22 = arith.addf %18, %21 : vector<8x1xf32>
    %23 = math.rsqrt %22 : vector<8x1xf32>
    %24 = vector.broadcast %23 : vector<8x1xf32> to vector<8x32xf32>
    %25 = arith.mulf %20, %24 : vector<8x32xf32>
    %26 = vector.broadcast %2 : vector<1x32xf32> to vector<8x32xf32>
    %27 = arith.mulf %25, %26 : vector<8x32xf32>
    %28 = vector.broadcast %3 : vector<1x32xf32> to vector<8x32xf32>
    %29 = arith.addf %27, %28 : vector<8x32xf32>
    %30 = arith.truncf %29 : vector<8x32xf32> to vector<8x32xbf16>
    %c0_7 = arith.constant 0 : index
    %c0_8 = arith.constant 0 : index
    %31 = vector.load %arg3[%c0_7, %c0_8] : memref<32x384xbf16, #tpu.memory_space<vmem>>, vector<32x384xbf16>
    %cst_9 = arith.constant dense<0.000000e+00> : vector<8x384xf32>
    %32 = tpu.matmul %30, %31, %cst_9 {dimension_numbers = #tpu.dot_dimension_numbers<[1], [0], [0], [1], [0, 0, 1, 1], [], []>} : vector<8x32xbf16>, vector<32x384xbf16>, vector<8x384xf32> -> vector<8x384xf32>
    %c0_10 = arith.constant 0 : index
    %c0_11 = arith.constant 0 : index
    %33 = vector.load %arg4[%c0_10, %c0_11] : memref<1x384xf32, #tpu.memory_space<vmem>>, vector<1x384xf32>
    %34 = vector.broadcast %33 : vector<1x384xf32> to vector<8x384xf32>
    %35 = arith.addf %32, %34 : vector<8x384xf32>
    %36 = vector.extract_strided_slice %35 {offsets = [0, 0], sizes = [8, 128], strides = [1, 1]} : vector<8x384xf32> to vector<8x128xf32>
    %37 = vector.shape_cast %36 : vector<8x128xf32> to vector<1x8x128xf32>
    %38 = vector.extract_strided_slice %35 {offsets = [0, 128], sizes = [8, 128], strides = [1, 1]} : vector<8x384xf32> to vector<8x128xf32>
    %39 = vector.shape_cast %38 : vector<8x128xf32> to vector<1x8x128xf32>
    %40 = vector.extract_strided_slice %35 {offsets = [0, 256], sizes = [8, 128], strides = [1, 1]} : vector<8x384xf32> to vector<8x128xf32>
    %41 = vector.shape_cast %40 : vector<8x128xf32> to vector<1x8x128xf32>
    %42 = arith.truncf %37 : vector<1x8x128xf32> to vector<1x8x128xbf16>
    %43 = arith.truncf %39 : vector<1x8x128xf32> to vector<1x8x128xbf16>
    "tpu.trace_start"() <{level = 10 : i32, message = "bqd,bkd->bqk"}> : () -> ()
    %cst_12 = arith.constant dense<0.000000e+00> : vector<1x8x8xf32>
    %44 = tpu.matmul %42, %43, %cst_12 {dimension_numbers = #tpu.dot_dimension_numbers<[2], [2], [1], [1], [0, 0, 0, 1, 1, 1], [0], [0]>} : vector<1x8x128xbf16>, vector<1x8x128xbf16>, vector<1x8x8xf32> -> vector<1x8x8xf32>
    "tpu.trace_stop"() : () -> ()
    %cst_13 = arith.constant dense<0xFF800000> : vector<1x8xf32>
    %45 = vector.multi_reduction <maximumf>, %44, %cst_13 [2] : vector<1x8x8xf32> to vector<1x8xf32>
    %46 = vector.shape_cast %45 : vector<1x8xf32> to vector<1x8x1xf32>
    %47 = vector.broadcast %46 : vector<1x8x1xf32> to vector<1x8x8xf32>
    %48 = arith.subf %44, %47 : vector<1x8x8xf32>
    %49 = math.exp %48 : vector<1x8x8xf32>
    %cst_14 = arith.constant dense<0.000000e+00> : vector<1x8xf32>
    %50 = vector.multi_reduction <add>, %49, %cst_14 [2] : vector<1x8x8xf32> to vector<1x8xf32>
    %51 = vector.shape_cast %50 : vector<1x8xf32> to vector<1x8x1xf32>
    %52 = tpu.reciprocal %51 {approx = true} : vector<1x8x1xf32> -> vector<1x8x1xf32>
    %53 = vector.broadcast %52 : vector<1x8x1xf32> to vector<1x8x8xf32>
    %54 = arith.mulf %49, %53 : vector<1x8x8xf32>
    %55 = arith.truncf %54 : vector<1x8x8xf32> to vector<1x8x8xbf16>
    %56 = arith.truncf %41 : vector<1x8x128xf32> to vector<1x8x128xbf16>
    "tpu.trace_start"() <{level = 10 : i32, message = "bqk,bkd->bqd"}> : () -> ()
    %cst_15 = arith.constant dense<0.000000e+00> : vector<1x8x128xf32>
    %57 = tpu.matmul %55, %56, %cst_15 {dimension_numbers = #tpu.dot_dimension_numbers<[2], [1], [1], [2], [0, 0, 0, 1, 1, 2], [0], [0]>} : vector<1x8x8xbf16>, vector<1x8x128xbf16>, vector<1x8x128xf32> -> vector<1x8x128xf32>
    "tpu.trace_stop"() : () -> ()
    %58 = vector.shape_cast %57 : vector<1x8x128xf32> to vector<8x128xf32>
    %59 = arith.truncf %58 : vector<8x128xf32> to vector<8x128xbf16>
    %c0_16 = arith.constant 0 : index
    %c0_17 = arith.constant 0 : index
    %60 = vector.load %arg5[%c0_16, %c0_17] : memref<128x32xbf16, #tpu.memory_space<vmem>>, vector<128x32xbf16>
    %cst_18 = arith.constant dense<0.000000e+00> : vector<8x32xf32>
    %61 = tpu.matmul %59, %60, %cst_18 {dimension_numbers = #tpu.dot_dimension_numbers<[1], [0], [0], [1], [0, 0, 1, 1], [], []>} : vector<8x128xbf16>, vector<128x32xbf16>, vector<8x32xf32> -> vector<8x32xf32>
    %62 = vector.broadcast %6 : vector<1x32xf32> to vector<8x32xf32>
    %63 = arith.addf %61, %62 : vector<8x32xf32>
    %64 = arith.addf %0, %63 : vector<8x32xf32>
    %cst_19 = arith.constant dense<0.000000e+00> : vector<8xf32>
    %65 = vector.multi_reduction <add>, %64, %cst_19 [1] : vector<8x32xf32> to vector<8xf32>
    %66 = vector.shape_cast %65 : vector<8xf32> to vector<8x1xf32>
    %cst_20 = arith.constant 3.200000e+01 : f32
    %67 = vector.broadcast %cst_20 : f32 to vector<8x1xf32>
    %68 = arith.divf %66, %67 : vector<8x1xf32>
    %69 = vector.broadcast %68 : vector<8x1xf32> to vector<8x32xf32>
    %70 = arith.subf %64, %69 : vector<8x32xf32>
    %71 = arith.mulf %70, %70 : vector<8x32xf32>
    %cst_21 = arith.constant dense<0.000000e+00> : vector<8xf32>
    %72 = vector.multi_reduction <add>, %71, %cst_21 [1] : vector<8x32xf32> to vector<8xf32>
    %73 = vector.shape_cast %72 : vector<8xf32> to vector<8x1xf32>
    %cst_22 = arith.constant 3.200000e+01 : f32
    %74 = vector.broadcast %cst_22 : f32 to vector<8x1xf32>
    %75 = arith.divf %73, %74 : vector<8x1xf32>
    %76 = vector.broadcast %68 : vector<8x1xf32> to vector<8x32xf32>
    %77 = arith.subf %64, %76 : vector<8x32xf32>
    %cst_23 = arith.constant 9.99999974E-6 : f32
    %78 = vector.broadcast %cst_23 : f32 to vector<8x1xf32>
    %79 = arith.addf %75, %78 : vector<8x1xf32>
    %80 = math.rsqrt %79 : vector<8x1xf32>
    %81 = vector.broadcast %80 : vector<8x1xf32> to vector<8x32xf32>
    %82 = arith.mulf %77, %81 : vector<8x32xf32>
    %83 = vector.broadcast %4 : vector<1x32xf32> to vector<8x32xf32>
    %84 = arith.mulf %82, %83 : vector<8x32xf32>
    %85 = vector.broadcast %5 : vector<1x32xf32> to vector<8x32xf32>
    %86 = arith.addf %84, %85 : vector<8x32xf32>
    %87 = arith.truncf %86 : vector<8x32xf32> to vector<8x32xbf16>
    %c0_24 = arith.constant 0 : index
    %c0_25 = arith.constant 0 : index
    %88 = vector.load %arg6[%c0_24, %c0_25] : memref<32x64xbf16, #tpu.memory_space<vmem>>, vector<32x64xbf16>
    %cst_26 = arith.constant dense<0.000000e+00> : vector<8x64xf32>
    %89 = tpu.matmul %87, %88, %cst_26 {dimension_numbers = #tpu.dot_dimension_numbers<[1], [0], [0], [1], [0, 0, 1, 1], [], []>} : vector<8x32xbf16>, vector<32x64xbf16>, vector<8x64xf32> -> vector<8x64xf32>
    %c0_27 = arith.constant 0 : index
    %c0_28 = arith.constant 0 : index
    %90 = vector.load %arg7[%c0_27, %c0_28] : memref<1x64xf32, #tpu.memory_space<vmem>>, vector<1x64xf32>
    %91 = vector.broadcast %90 : vector<1x64xf32> to vector<8x64xf32>
    %92 = arith.addf %89, %91 : vector<8x64xf32>
    %93 = arith.negf %92 : vector<8x64xf32>
    %94 = math.exp %93 : vector<8x64xf32>
    %cst_29 = arith.constant 1.000000e+00 : f32
    %95 = vector.broadcast %cst_29 : f32 to vector<8x64xf32>
    %96 = arith.addf %95, %94 : vector<8x64xf32>
    %97 = arith.divf %95, %96 : vector<8x64xf32>
    %98 = arith.mulf %92, %97 : vector<8x64xf32>
    %99 = arith.truncf %98 : vector<8x64xf32> to vector<8x64xbf16>
    %c0_30 = arith.constant 0 : index
    %c0_31 = arith.constant 0 : index
    %100 = vector.load %arg8[%c0_30, %c0_31] : memref<64x32xbf16, #tpu.memory_space<vmem>>, vector<64x32xbf16>
    %cst_32 = arith.constant dense<0.000000e+00> : vector<8x32xf32>
    %101 = tpu.matmul %99, %100, %cst_32 {dimension_numbers = #tpu.dot_dimension_numbers<[1], [0], [0], [1], [0, 0, 1, 1], [], []>} : vector<8x64xbf16>, vector<64x32xbf16>, vector<8x32xf32> -> vector<8x32xf32>
    %102 = vector.broadcast %7 : vector<1x32xf32> to vector<8x32xf32>
    %103 = arith.addf %101, %102 : vector<8x32xf32>
    %104 = arith.addf %64, %103 : vector<8x32xf32>
    %c0_33 = arith.constant 0 : index
    %c0_34 = arith.constant 0 : index
    %105 = vector.load %arg9[%c0_33, %c0_34] : memref<8x32xf32, #tpu.memory_space<vmem>>, vector<8x32xf32>
    tpu.vector_store %arg9[%c0_33, %c0_34], %104 {strides = array<i32>} : memref<8x32xf32, #tpu.memory_space<vmem>>, vector<8x32xf32>,
    return
  }
  func.func @transform_0(%arg0: i32) -> (i32, i32) {
    %c0_i32 = arith.constant 0 : i32
    %c0_i32_0 = arith.constant 0 : i32
    return %arg0, %c0_i32 : i32, i32
  }
  func.func @transform_1(%arg0: i32) -> (i32, i32) {
    %c0_i32 = arith.constant 0 : i32
    %c0_i32_0 = arith.constant 0 : i32
    %c0_i32_1 = arith.constant 0 : i32
    return %c0_i32, %c0_i32_0 : i32, i32
  }
  func.func @transform_2(%arg0: i32) -> (i32, i32) {
    %c0_i32 = arith.constant 0 : i32
    %c0_i32_0 = arith.constant 0 : i32
    %c0_i32_1 = arith.constant 0 : i32
    return %c0_i32, %c0_i32_0 : i32, i32
  }
  func.func @transform_3(%arg0: i32) -> (i32, i32) {
    %c0_i32 = arith.constant 0 : i32
    %c0_i32_0 = arith.constant 0 : i32
    %c0_i32_1 = arith.constant 0 : i32
    return %c0_i32, %c0_i32_0 : i32, i32
  }
  func.func @transform_4(%arg0: i32) -> (i32, i32) {
    %c0_i32 = arith.constant 0 : i32
    %c0_i32_0 = arith.constant 0 : i32
    %c0_i32_1 = arith.constant 0 : i32
    return %c0_i32, %c0_i32_0 : i32, i32
  }
  func.func @transform_5(%arg0: i32) -> (i32, i32) {
    %c0_i32 = arith.constant 0 : i32
    %c0_i32_0 = arith.constant 0 : i32
    %c0_i32_1 = arith.constant 0 : i32
    return %c0_i32, %c0_i32_0 : i32, i32
  }
  func.func @transform_6(%arg0: i32) -> (i32, i32) {
    %c0_i32 = arith.constant 0 : i32
    %c0_i32_0 = arith.constant 0 : i32
    %c0_i32_1 = arith.constant 0 : i32
    return %c0_i32, %c0_i32_0 : i32, i32
  }
  func.func @transform_7(%arg0: i32) -> (i32, i32) {
    %c0_i32 = arith.constant 0 : i32
    %c0_i32_0 = arith.constant 0 : i32
    %c0_i32_1 = arith.constant 0 : i32
    return %c0_i32, %c0_i32_0 : i32, i32
  }
  func.func @transform_8(%arg0: i32) -> (i32, i32) {
    %c0_i32 = arith.constant 0 : i32
    %c0_i32_0 = arith.constant 0 : i32
    return %arg0, %c0_i32 : i32, i32
  }
}

</mosaic_0001>

<bundles_post_ra>
// kernel: tpu_custom_call.1
= control target key start
LH: loop header
LB: loop body
LE: loop exit
PB: predicated region body
PF: predicated region fallthrough
CT: control target
= control target key end

     0   :  { %13 = vsyncpa [#allocation3], 0  ;;  %s1487_s0 = inlined_call_operand.vmem [shape: f32[16,32], index: 0, kind: input, shape index: {}]   ;;  %s1488_s1 = inlined_call_operand.vmem [shape: f32[6,32], index: 1, kind: input, shape index: {}]   ;;  %s1489_s2 = inlined_call_operand.vmem [shape: bf16[32,384], index: 2, kind: input, shape index: {}]   ;;  %s1490_s3 = inlined_call_operand.vmem [shape: f32[1,384], index: 3, kind: input, shape index: {}]   ;;  %s1491_s4 = inlined_call_operand.vmem [shape: bf16[128,32], index: 4, kind: input, shape index: {}]   ;;  %s1492_s5 = inlined_call_operand.vmem [shape: bf16[32,64], index: 5, kind: input, shape index: {}]   ;;  %s1493_s6 = inlined_call_operand.vmem [shape: f32[1,64], index: 6, kind: input, shape index: {}]   ;;  %s1494_s7 = inlined_call_operand.vmem [shape: bf16[64,32], index: 7, kind: input, shape index: {}]   ;;  %s1495_s8 = inlined_call_operand.hbm [shape: f32[16,32], index: 8, kind: output, shape index: {}]  }
   0x1   :  { %15 = vsyncpa [#allocation3 + $0x1], 0  ;;  %s1247_s27 = smov 0   ;;  %s1249_s28 = smov 0  }
   0x2   :  { %s1251_s29 = smov 0   ;;  %s1253_s30 = smov 0  }
   0x3 LB: > { %s1268_s9 = sadd.s32 4294967295, %s1196_s30   ;;  %s937_s10 = sadd.s32 4294967294, %s1196_s30   ;;  %s1196_s30 = sphi %s1253_s30, %s1501_s30   ;;  %s1192_s29 = sphi %s1251_s29, %s1500_s29   ;;  %s1188_s28 = sphi %s1249_s28, %s1499_s28   ;;  %s1184_s27 = sphi %s1247_s27, %s1498_s27  }
   0x4   : > { %s1272_s11 = sadd.s32 1, %s1196_s30   ;;  %s201_s12 = sadd.s32 1, %s1192_s29 }
   0x5   : > { %s198_s13 = ssub.s32 %s1196_s30, %s1272_s11  ;;  %p211_p0 = scmp.ne.s32.totalorder %s1192_s29, %s1188_s28 }
   0x6   : > { %p199_p1 = scmp.eq.s32.totalorder %s198_s13, 0  ;;  %p212_p2 = scmp.eq.s32.totalorder %s1268_s9, 1 }
   0x7   : > { %p217_p3 = scmp.ne.s32.totalorder %s1188_s28, %s1184_s27  ;;  %p218_p4 = scmp.eq.s32.totalorder %s937_s10, 1 }
   0x8   : > { %s1283_s14 = scalar_select %p199_p1, %s1192_s29, %s201_s12  }
   0x9   : > { %p1285_p5 = por %p212_p2, %p211_p0  ;;  %p1289_p6 = por %p218_p4, %p217_p3 }
   0xa   : > { %p940_p7 = scmp.ge.s32.totalorder %s1196_s30, 1  ;;  %p264_p8 = scmp.lt.s32.totalorder %s1196_s30, 3 }
   0xc   : > { %p265_p9 = pnand %p940_p7, %p264_p8 }
   0xd   : > { %p297_p10 = scmp.lt.s32.totalorder (!%p265_p9), %s1268_s9, 1  ;;  %vm304_vm0 = vcmask (!%p265_p9), 261120   ;;  %v1100_v7 = vld [vmem:[%s1489_s2 + $0x4] ss:$12 sps:$4 sm:$0xff] (!%p265_p9)   ;;  %v1102_v8 = vld [vmem:[%s1489_s2] ss:$12 sps:$4 sm:$0xff] (!%p265_p9)   ;;  %v319_v17 = vlaneseq (!%p265_p9) }
   0xe   : > { %268 = sbr.rel (%p265_p9) target bundleno = 2312 (0x908), region = 52  ;;  %v1198_v9 = vmov (!%p265_p9), 0.0   ;;  %v1103_v10 = vld [vmem:[%s1489_s2 + $0x8] ss:$12 sps:$4 sm:$0xff] (!%p265_p9)   ;;  %v1199_v12 = vmov (!%p265_p9), 0   ;;  %390 = vmatprep.subr.bf16.mxu0 (!%p265_p9), %v1100_v7  ;;  %vm1200_vm1 = vmmov (!%p265_p9), 0  }
   0xf   : > { %998 = vmatprep.subr.bf16.mxu1 (!%p265_p9), %v1198_v9  ;;  %v1104_v11 = vld [vmem:[%s1489_s2 + $0x1c] ss:$12 sps:$4 sm:$0xff] (!%p265_p9)   ;;  %422 = vmatprep.mubr.bf16.mxu0 (!%p265_p9), %v1199_v12  ;;  %v1106_v13 = vld [vmem:[%s1489_s2 + $0x18] ss:$12 sps:$4 sm:$0xff] (!%p265_p9)   ;;  %v1107_v14 = vld [vmem:[%s1489_s2 + $0x20] ss:$12 sps:$4 sm:$0xff] (!%p265_p9)  }
  0x10   : > { %391 = vmatpush1.bf16.msra.mxu0 (!%p265_p9), %v1102_v8  ;;  %999 = vmatpush3.bf16.msra.mxu1 (!%p265_p9), %v1103_v10  ;;  %v1330_v19 = vshrl.u32 (!%p265_p9), %v319_v17, 7  ;;  %v1336_v21 = vld [vmem:[%s1488_s1] sm:$0x3f] (!%p265_p9)  ;;  %vm530_vm2 = vcmask (!%p265_p9), 1043456   ;;  %vm513_vm3 = vcmask (!%p265_p9), 64512   ;;  %v1109_v61 = vld [vmem:[%s1491_s4 + $0x8] sm:$0xff] (!%p265_p9)  }
  0x11   : > { %392 = vmatprep.subr.bf16.mxu0 (!%p265_p9), %v1104_v11  ;;  %1000 = vmatprep.subr.bf16.mxu1 (!%p265_p9), %v1198_v9  ;;  %v338_v31 = vld [vmem:[%s1490_s3] sm:$0x7] (!%p265_p9)  ;;  %v1110_v62 = vld [vmem:[%s1491_s4 + $0x10] sm:$0xff] (!%p265_p9)   ;;  %v1111_v63 = vld [vmem:[%s1491_s4 + $0x18] sm:$0xff] (!%p265_p9)   ;;  %vm818_vm4 = vcmask (!%p265_p9), 523264   ;;  %s294_s13 = sand.u32 (!%p265_p9), 1, %s1188_s28  }
  0x12   : > { %1002 = vmatprep.mubr.msk.bf16.mxu1 (!%p265_p9), %vm1200_vm1, %v1198_v9  ;;  %v321_v20 = vsub.s32 (!%p265_p9), 0, %v1330_v19  ;;  %v326_v22 = vsub.s32 (!%p265_p9), 1, %v1330_v19  ;;  %v350_v30 = vsub.s32 (!%p265_p9), 2, %v1330_v19  ;;  %v1108_v60 = vld [vmem:[%s1491_s4] sm:$0xff] (!%p265_p9)   ;;  %v1115_v8 = vld [vmem:[%s1491_s4 + $0x38] sm:$0xff] (!%p265_p9)   ;;  %s1201_s25 = smov (!%p265_p9), [#allocation2]  }
  0x13   : > { %s1138_s26 = sshll.u32 (!%p265_p9), %s1201_s25, 4  ;;  %s1139_s26 = int_to_ptr.vmem [resolvable:$false] %s1138_s26 }
  0x14   : > { %393 = vmatpush1.bf16.msra.mxu0 (!%p265_p9), %v1106_v13  ;;  %1001 = vmatpush3.bf16.msra.mxu1 (!%p265_p9), %v1107_v14  ;;  %v322_v23 = vrot.slane (!%p265_p9), %v1336_v21, %v321_v20  ;;  %v327_v26 = vrot.slane (!%p265_p9), %v1336_v21, %v326_v22  ;;  %v343_v32 = vrot.slane (!%p265_p9), %v338_v31, %v321_v20  ;;  %s1140_s10 = scalar_lea.vmem (!%p265_p9), %s1139_s26, 256 }
  0x15   : > { %s298_s17 = scalar_select %p297_p10, %s1268_s9, 1  ;;  %1006 = vmatprep.subr.bf16.mxu0 %v1198_v9  ;;  %1012 = vmatprep.subr.bf16.mxu1 %v1198_v9  ;;  %v351_v33 = vrot.slane %v338_v31, %v350_v30  ;;  %v347_v34 = vrot.slane %v338_v31, %v326_v22 }
  0x17   : > { %s942_s18 = sshll.u32 %s298_s17, 3  ;;  %s941_s17 = sshll.u32 %s294_s13, 3 }
  0x18   : > { %s300_s21 = scalar_lea.vmem %s1487_s0, %s942_s18  ;;  %s971_s18 = sshll.u32 %s1268_s9, 7 }
  0x19   : > { %v1300_v0 = vld [vmem:[%s300_s21] sm:$0xff]  ;;  %s296_s19 = scalar_lea.vmem [#allocation2], %s941_s17  ;;  %s1444_s23 = scalar_lea.hbm %s1495_s8, %s971_s18 }
  0x1a   : > { %v305_v1 = vsel %vm304_vm0, %v1300_v0, 0.0  ;;  %s878_s20 = sshll.u32 %s296_s19, 4  ;;  %s865_s9 = scalar_lea.sflag [#allocation3], %s294_s13  ;;  %s1446_s20 = int_to_ptr.vmem [resolvable:$true] %s878_s20 }
  0x1b   : > { %306 = vadd.xlane.f32.xlu0 %v305_v1  ;;  %v1112_v1 = vld [vmem:[%s1491_s4 + $0x20] sm:$0xff]   ;;  %s1134_s24 = scalar_lea.vmem %s1446_s20, 128  ;;  %p1141_p0 = scmp.lt.s32.totalorder %s1446_s20, %s1139_s26 }
  0x1c   : > { %p1135_p11 = scmp.ne.s32.totalorder %s1446_s20, %s1134_s24  ;;  %p1142_p1 = scmp.lt.s32.totalorder %s1140_s10, %s1134_s24 }
  0x1e   : > { %p1136_p12 = pnand %p1135_p11, %p1285_p5  ;;  %p1143_p2 = por %p1142_p1, %p1141_p0 }
  0x20   : > { %p1137_p13 = pneg %p1136_p12 }
  0x22   : > { %p1144_p3 = pnand %p1143_p2, %p1137_p13 }
  0xa8   : > { %v307_v2 = vpop.xlane.xlu0 %306 }
  0xa9   : > { %v309_v3 = vmul.f32 0.03125, %v307_v2  ;;  %v1113_v2 = vld [vmem:[%s1491_s4 + $0x28] sm:$0xff]  }
  0xab   : > { %v310_v4 = vsub.f32 %v1300_v0, %v309_v3  ;;  %v1114_v3 = vld [vmem:[%s1491_s4 + $0x30] sm:$0xff]  }
  0xad   : > { %v311_v5 = vmul.f32 %v310_v4, %v310_v4 }
  0xaf   : > { %v312_v6 = vsel %vm304_vm0, %v311_v5, 0.0 }
  0xb0   : > { %313 = vadd.xlane.f32.xlu0 %v312_v6 }
 0x13d   : > { %v314_v15 = vpop.xlane.xlu0 %313 }
 0x13e   : > { %v315_v16 = vmul.f32 0.03125, %v314_v15  ;;  %v593_v15 = vsub.s32 4, %v1330_v19 }
 0x140   : > { %v316_v18 = vadd.f32 1e-05, %v315_v16  ;;  %v594_v16 = vrot.slane %v1336_v21, %v593_v15 }
 0x142   : > { %1122 = vrsqrt.f32 %v316_v18 }
 0x14c   : > { %v1123_v24 = vpop.eup %1122 }
 0x14d   : > { %v318_v25 = vmul.f32 %v1123_v24, %v310_v4 }
 0x14f   : > { %v323_v27 = vmul.f32 %v322_v23, %v318_v25 }
 0x151   : > { %v328_v28 = vadd.f32 %v327_v26, %v323_v27 }
 0x153   : > { %v329_v29 = vpack.c.bf16 %v328_v28, %v328_v28 }
 0x155   : > { %949 = vmatmul.mubr.msk.bf16.vlgmr.msra.gmra.mrb[0].mxu0 %vm304_vm0, %v329_v29  ;;  %1003 = vmatmul.mubr.msk.bf16.vlgmr.msra.gmra.mrb[0].mxu1 %vm304_vm0, %v329_v29 }
 0x156   : > { %1008 = vmatprep.mubr.msk.bf16.mxu0 %vm1200_vm1, %v1198_v9  ;;  %1014 = vmatprep.mubr.msk.bf16.mxu1 %vm1200_vm1, %v1198_v9 }
 0x228   : > { %v424_v35 = vpop.f32.mrb[0].mxu0  ;;  %v465_v36 = vpop.f32.mrb[0].mxu1 }
 0x229   : > { %v425_v37 = vadd.f32 %v424_v35, %v343_v32  ;;  %v466_v38 = vadd.f32 %v465_v36, %v351_v33  ;;  %v426_v39 = vpop.f32.mrb[1].mxu0  ;;  %v1004_v40 = vpop.f32.mrb[1].mxu1  ;;  %v1116_v32 = vld [vmem:[%s1492_s5] sm:$0xff]   ;;  %v704_v36 = vsub.s32 3, %v1330_v19 }
 0x22a   : > { %v427_v41 = vadd.f32 %v426_v39, %v347_v34  ;;  %v428_v42 = vpop.f32.mrb[2].mxu0  ;;  %v468_v43 = vpop.f32.mrb[2].mxu1 }
 0x22b   : > { %v526_v44 = vpack.c.bf16 %v466_v38, %v466_v38  ;;  %v429_v45 = vpop.f32.mrb[3].mxu0  ;;  %v1005_v46 = vpop.f32.mrb[3].mxu1  ;;  %v471_v49 = vpack.c.bf16 %v425_v37, %v425_v37  ;;  %v700_v37 = vrot.slane %v1336_v21, %v350_v30  ;;  %v705_v40 = vrot.slane %v1336_v21, %v704_v36  ;;  %v1119_v30 = vld [vmem:[%s1494_s7 + $0x8] sm:$0xff]  }
 0x22c   : > { %v472_v47 = vpack.c.bf16 %v427_v41, %v427_v41  ;;  %v1120_v45 = vld [vmem:[%s1494_s7 + $0x10] sm:$0xff]   ;;  %v1121_v46 = vld [vmem:[%s1494_s7 + $0x18] sm:$0xff]  }
 0x22d   : > { %v532_v48 = vsel %vm530_vm2, %v526_v44, 0  ;;  %v1118_v44 = vld [vmem:[%s1494_s7] sm:$0xff]  }
 0x22e   : > { %1007 = vmatpush3.bf16.xpose.msra.mxu0 %v472_v47  ;;  %1013 = vmatpush3.bf16.msra.mxu1 %v532_v48  ;;  %v960_v47 = vld [vmem:[%s1493_s6] ss:$0 sm:$0xff] }
 0x22f   : > { %1018 = vmatprep.subr.bf16.mxu0 %v1198_v9  ;;  %1038 = vmatprep.subr.bf16.mxu1 %v1198_v9 }
 0x235   : > { %1009 = vmatmul.mubr.bf16.vlgmr.msra.gmra.mrb[4].mxu0 %v471_v49 }
 0x236   : > { %1034 = vmatprep.mubr.msk.bf16.mxu0 %vm1200_vm1, %v1198_v9  ;;  %1019 = vmatpush3.bf16.msra.mxu0 %v1108_v60 }
 0x237   : > { %1020 = vmatprep.subr.bf16.mxu0 %v1198_v9 }
 0x23a   : > { %1021 = vmatpush3.bf16.msra.mxu0 %v1109_v61 }
 0x23b   : > { %1022 = vmatprep.subr.bf16.mxu0 %v1198_v9 }
 0x23e   : > { %1023 = vmatpush3.bf16.msra.mxu0 %v1110_v62 }
 0x23f   : > { %1024 = vmatprep.subr.bf16.mxu0 %v1198_v9 }
 0x242   : > { %1025 = vmatpush3.bf16.msra.mxu0 %v1111_v63 }
 0x243   : > { %1026 = vmatprep.subr.bf16.mxu0 %v1198_v9 }
 0x246   : > { %1027 = vmatpush3.bf16.msra.mxu0 %v1112_v1 }
 0x247   : > { %1028 = vmatprep.subr.bf16.mxu0 %v1198_v9 }
 0x24a   : > { %1029 = vmatpush3.bf16.msra.mxu0 %v1113_v2 }
 0x24b   : > { %1030 = vmatprep.subr.bf16.mxu0 %v1198_v9 }
 0x24e   : > { %1031 = vmatpush3.bf16.msra.mxu0 %v1114_v3 }
 0x24f   : > { %1032 = vmatprep.subr.bf16.mxu0 %v1198_v9 }
 0x252   : > { %1033 = vmatpush3.bf16.msra.mxu0 %v1115_v8 }
 0x308   : > { %v507_v50 = vpop.f32.mrb[4].mxu0 }
 0x309   : > { %v1010_v51 = vpop.f32.mrb[5].mxu0  ;;  %v514_v52 = vsel %vm513_vm3, %v507_v50, -inf }
 0x30a   : > { %515 = vmax.xlane.f32.xlu1 %v514_v52  ;;  %v510_v53 = vpop.f32.mrb[6].mxu0 }
 0x30b   : > { %v1011_v54 = vpop.f32.mrb[7].mxu0 }
 0x397   : > { %v516_v55 = vpop.xlane.xlu1 %515 }
 0x398   : > { %v517_v56 = vsub.f32 %v507_v50, %v516_v55 }
 0x39a   : > { %v518_v57 = vmul.f32 1.442695, %v517_v56 }
 0x39c   : > { %1124 = vpow2.f32 %v518_v57 }
 0x3a6   : > { %v1125_v58 = vpop.eup %1124 }
 0x3a7   : > { %v520_v59 = vsel %vm513_vm3, %v1125_v58, 0.0 }
 0x3a8   : > { %521 = vadd.xlane.f32.xlu1 %v520_v59 }
 0x435   : > { %v522_v4 = vpop.xlane.xlu1 %521 }
 0x436   : > { %1126 = vrcp.f32 %v522_v4 }
 0x440   : > { %v1127_v5 = vpop.eup %1126 }
 0x441   : > { %v524_v6 = vmul.f32 %v1127_v5, %v1125_v58  ;;  %v792_v58 = vsub.s32 5, %v1330_v19 }
 0x443   : > { %v525_v7 = vpack.c.bf16 %v524_v6, %v524_v6  ;;  %v793_v59 = vrot.slane %v1336_v21, %v792_v58 }
 0x445   : > { %1015 = vmatmul.mubr.msk.bf16.vlgmr.msra.gmra.mrb[4].mxu1 %vm513_vm3, %v525_v7 }
 0x446   : > { %1042 = vmatprep.mubr.msk.bf16.mxu1 %vm1200_vm1, %v1198_v9  ;;  %1039 = vmatpush3.bf16.msra.mxu1 %v1116_v32 }
 0x447   : > { %1040 = vmatprep.subr.bf16.mxu1 %v1198_v9 }
 0x518   : > { %v568_v10 = vpop.f32.mrb[4].mxu1 }
 0x519   : > { %v574_v11 = vpack.c.bf16 %v568_v10, %v568_v10  ;;  %v1016_v12 = vpop.f32.mrb[5].mxu1 }
 0x51a   : > { %v571_v13 = vpop.f32.mrb[6].mxu1 }
 0x51b   : > { %v1017_v14 = vpop.f32.mrb[7].mxu1  ;;  %1035 = vmatmul.mubr.bf16.vlgmr.msra.gmra.mrb[8].mxu0 %v574_v11 }
 0x5ee   : > { %v677_v17 = vpop.f32.mrb[8].mxu0 }
 0x5ef   : > { %v678_v18 = vadd.f32 %v677_v17, %v594_v16  ;;  %v1036_v20 = vpop.f32.mrb[9].mxu0 }
 0x5f0   : > { %v680_v22 = vpop.f32.mrb[10].mxu0 }
 0x5f1   : > { %v1396_v23 = vadd.f32 %v678_v18, %v1300_v0  ;;  %v1037_v24 = vpop.f32.mrb[11].mxu0  ;;  %v1117_v0 = vld [vmem:[%s1492_s5 + $0x8] sm:$0xff]  }
 0x5f2   : > { %1041 = vmatpush3.bf16.msra.mxu1 %v1117_v0 }
 0x5f3   : > { %v684_v25 = vsel %vm304_vm0, %v1396_v23, 0.0  ;;  %1046 = vmatprep.subr.bf16.mxu1 %v1198_v9 }
 0x5f4   : > { %685 = vadd.xlane.f32.xlu0 %v684_v25 }
 0x681   : > { %v686_v26 = vpop.xlane.xlu0 %685 }
 0x682   : > { %v687_v27 = vmul.f32 0.03125, %v686_v26 }
 0x684   : > { %v688_v28 = vsub.f32 %v1396_v23, %v687_v27 }
 0x686   : > { %v689_v29 = vmul.f32 %v688_v28, %v688_v28 }
 0x688   : > { %v690_v31 = vsel %vm304_vm0, %v689_v29, 0.0 }
 0x689   : > { %691 = vadd.xlane.f32.xlu1 %v690_v31 }
 0x716   : > { %v692_v33 = vpop.xlane.xlu1 %691 }
 0x717   : > { %v693_v34 = vmul.f32 0.03125, %v692_v33 }
 0x719   : > { %v694_v35 = vadd.f32 1e-05, %v693_v34 }
 0x71b   : > { %1128 = vrsqrt.f32 %v694_v35 }
 0x725   : > { %v1129_v38 = vpop.eup %1128 }
 0x726   : > { %v696_v39 = vmul.f32 %v1129_v38, %v688_v28 }
 0x728   : > { %v701_v41 = vmul.f32 %v700_v37, %v696_v39 }
 0x72a   : > { %v706_v42 = vadd.f32 %v705_v40, %v701_v41 }
 0x72c   : > { %v707_v43 = vpack.c.bf16 %v706_v42, %v706_v42 }
 0x72e   : > { %1043 = vmatmul.mubr.msk.bf16.vlgmr.msra.gmra.mrb[8].mxu1 %vm304_vm0, %v707_v43 }
 0x72f   : > { %1054 = vmatprep.mubr.msk.bf16.mxu1 %vm1200_vm1, %v1198_v9  ;;  %1047 = vmatpush3.bf16.msra.mxu1 %v1118_v44 }
 0x730   : > { %1048 = vmatprep.subr.bf16.mxu1 %v1198_v9 }
 0x733   : > { %1049 = vmatpush3.bf16.msra.mxu1 %v1119_v30 }
 0x734   : > { %1050 = vmatprep.subr.bf16.mxu1 %v1198_v9 }
 0x737   : > { %1051 = vmatpush3.bf16.msra.mxu1 %v1120_v45 }
 0x738   : > { %1052 = vmatprep.subr.bf16.mxu1 %v1198_v9 }
 0x73b   : > { %1053 = vmatpush3.bf16.msra.mxu1 %v1121_v46 }
 0x801   : > { %v768_v48 = vpop.f32.mrb[8].mxu1 }
 0x802   : > { %v769_v49 = vadd.f32 %v960_v47, %v768_v48  ;;  %v1044_v50 = vpop.f32.mrb[9].mxu1 }
 0x803   : > { %v771_v51 = vpop.f32.mrb[10].mxu1 }
 0x804   : > { %v964_v52 = vmul.f32 -1.442695, %v769_v49  ;;  %v1045_v53 = vpop.f32.mrb[11].mxu1 }
 0x806   : > { %1130 = vpow2.f32 %v964_v52 }
 0x810   : > { %v1131_v54 = vpop.eup %1130 }
 0x811   : > { %v777_v9 = vadd.f32 1.0, %v1131_v54 }
 0x813   : > { %1132 = vrcp.f32 %v777_v9 }
 0x81d   : > { %v1133_v55 = vpop.eup %1132 }
 0x81e   : > { %v780_v56 = vmul.f32 %v1133_v55, %v769_v49 }
 0x820   : > { %v781_v57 = vpack.c.bf16 %v780_v56, %v780_v56 }
 0x822   : > { %1055 = vmatmul.mubr.msk.bf16.vlgmr.msra.gmra.mrb[12].mxu1 %vm818_vm4, %v781_v57 }
 0x8f5   : > { %v856_v60 = vpop.f32.mrb[12].mxu1 }
 0x8f6   : > { %v857_v61 = vadd.f32 %v856_v60, %v793_v59  ;;  %v1056_v62 = vpop.f32.mrb[13].mxu1 }
 0x8f7   : > { %v859_v63 = vpop.f32.mrb[14].mxu1 }
 0x8f8   : > { %v862_v1 = vadd.f32 %v857_v61, %v1396_v23  ;;  %v1057_v2 = vpop.f32.mrb[15].mxu1 }
 0x8fa   : > { %863 = vst.msk [vmem:[%s296_s19] sm:$0xff] %vm304_vm0, %v862_v1 }
 0x8fb   : > { %1147 = shalt.err (!%p1144_p3)
}
 0x8fc   : > { %s1148_s12 = scalar_lea.hbm %s1444_s23, 128  ;;  %s1152_s18 = scalar_lea.hbm %s1495_s8, 256 }
 0x8fd   : > { %p1149_p4 = scmp.ne.s32.totalorder %s1444_s23, %s1148_s12  ;;  %p1153_p9 = scmp.lt.u32.totalorder %s1444_s23, %s1495_s8 }
 0x8fe   : > { %p1154_p10 = scmp.lt.u32.totalorder %s1152_s18, %s1148_s12  ;;  %p1156_p12 = scmp.lt.u32.totalorder %s1148_s12, %s1444_s23 }
 0x8ff   : > { %p1150_p7 = pnand %p1149_p4, %p1285_p5 }
 0x900   : > { %p1155_p11 = por %p1154_p10, %p1153_p9 }
 0x901   : > { %p1151_p8 = pneg %p1150_p7 }
 0x902   : > { %p1157_p13 = por %p1156_p12, %p1155_p11 }
 0x904   : > { %p1158_p0 = pnand %p1157_p13, %p1151_p8 }
 0x906   : > { %1161 = shalt.err (!%p1158_p0)
}
 0x907   : > { %1058 = dma.vmem_to_hbm [thread:$0]  (%p1285_p5), %s1446_s20, 128, %s1444_s23, %s865_s9  }
 0x908 PF: > { %p1064_p1 = scmp.ge.s32.totalorder %s1196_s30, 2  ;;  %s890_s22 = sand.u32 1, %s1184_s27  }
 0x909   : > { %s891_s24 = scalar_lea.sflag [#allocation3], %s890_s22 }
 0x90a   : > { %p1061_p2 = pnand %p1064_p1, %p1289_p6 }
 0x90c   : > { %1179 = dma.done.wait (!%p1061_p2), %s891_s24, 128  }
 0x90d   : > { %1181 = vsyncadd (!%p1061_p2), %s891_s24, 4294967168  ;;  %p18_p3 = scmp.ge.s32.totalorder %s1272_s11, 4   ;;  %s1498_s27 = smov %s1188_s28 }
 0x90e   : > { %s1499_s28 = smov %s1192_s29  ;;  %s1500_s29 = smov %s1283_s14 }
 0x90f   : > { %s1501_s30 = smov %s1272_s11  ;;  %20 = sbr.rel (!%p18_p3) target bundleno = 3 (0x3), region = 87 }
 0x916   :  { %896 = vsyncpa [#allocation3], 1 }
 0x917   :  { %898 = vsyncpa [#allocation3 + $0x1], 1 }

</bundles_post_ra>
